<compile_context>
chip_gen: v5e
topology: v5e:2x2
jax: 0.10.0
libtpu: 0.0.40
codegen_flags: <defaults>
</compile_context>

<pallas_src>
import functools

import jax
import jax.numpy as jnp
from jax.experimental import pallas as pl
from jax.experimental.pallas import tpu as pltpu


def _cdiv(a, b):
    return -(-a // b)


def _snake_kernel(x_ref, alpha_ref, inv_alpha_ref, o_ref, *, bf16_sin):
    # x_ref / o_ref: (C, t_tile) tile (batch dim squeezed out by BlockSpec)
    # alpha_ref / inv_alpha_ref: (C, 1) float32, broadcast over the time axis
    if bf16_sin:
        # v7x option: sin polynomial + square in bf16 (bf16 VALU), final
        # scale/add kept in f32.  Off by default.
        xb = x_ref[...].astype(jnp.bfloat16)
        s = jnp.sin(alpha_ref[...].astype(jnp.bfloat16) * xb)
        s2 = (s * s).astype(jnp.float32)
        y = x_ref[...].astype(jnp.float32) + inv_alpha_ref[...] * s2
    else:
        x = x_ref[...].astype(jnp.float32)
        s = jnp.sin(alpha_ref[...] * x)
        y = x + inv_alpha_ref[...] * (s * s)
    o_ref[...] = y.astype(o_ref.dtype)


def _pick_t_tile(B, C, T, elem_bytes_f32eq):
    """Lane-dense time tile: ~4 MiB (f32-equivalent), multiple of 128."""
    t128 = _cdiv(T, 128) * 128
    target_bytes = 4 * 1024 * 1024
    t_tile = (target_bytes // max(C * elem_bytes_f32eq, 1)) // 128 * 128
    t_tile = max(128, min(t_tile, t128))
    # Keep enough grid steps for the pipeline to overlap DMA with compute.
    while t_tile > 128 and B * _cdiv(T, t_tile) < 8:
        t_tile = max(128, (t_tile // 2) // 128 * 128)
    # Prefer an even total step count so v7x's two TensorCores stay balanced.
    if (B * _cdiv(T, t_tile)) % 2 == 1 and t_tile > 128:
        cand = max(128, (t_tile // 2) // 128 * 128)
        if (B * _cdiv(T, cand)) % 2 == 0:
            t_tile = cand
    return t_tile


def snake1d(x, alpha, *, t_tile=None, bf16_sin=False, donate_x=False):
    """Snake1d forward.

    x:     (B, C, T) (or (B, C, ...) — trailing dims are flattened like torch)
    alpha: (1, C, 1)  (PyTorch parameter shape)
    returns same shape and dtype as x.
    """
    orig_shape = x.shape
    B, C = orig_shape[0], orig_shape[1]
    x3 = x.reshape(B, C, -1)
    T = x3.shape[2]

    # Per-channel parameters in float32 (precision-safe even for bf16 x),
    # reciprocal hoisted out of the kernel.
    alpha_f32 = alpha.reshape(C, 1).astype(jnp.float32)
    inv_alpha_f32 = 1.0 / (alpha_f32 + 1e-9)

    itemsize = x.dtype.itemsize
    # In-kernel math upcasts to f32, so budget tiles in f32-equivalent bytes.
    elem_bytes_f32eq = max(itemsize, 4)
    if t_tile is None:
        t_tile = _pick_t_tile(B, C, T, elem_bytes_f32eq)
    num_t_tiles = _cdiv(T, t_tile)

    # in + out double-buffered plus f32 temporaries -> ~8x the f32-equiv tile,
    # clamped to a range safe on all generations (v7x: 64 MiB physical VMEM;
    # v5e needs the explicit raise above its 16 MiB scoped default).
    tile_f32_bytes = C * t_tile * 4
    vmem_limit_bytes = int(min(48 * 1024 * 1024,
                               max(16 * 1024 * 1024, 8 * tile_f32_bytes)))

    elems = B * C * T
    cost = pl.CostEstimate(
        flops=5 * elems,
        transcendentals=elems,
        bytes_accessed=2 * elems * itemsize + 2 * C * 4,
    )

    kernel = functools.partial(_snake_kernel, bf16_sin=bf16_sin)

    out = pl.pallas_call(
        kernel,
        out_shape=jax.ShapeDtypeStruct((B, C, T), x.dtype),
        grid_spec=pltpu.PrefetchScalarGridSpec(
            num_scalar_prefetch=0,
            grid=(B, num_t_tiles),
            in_specs=[
                # x tile: batch dim squeezed -> kernel sees (C, t_tile).
                # The last time tile may be partial; Pallas masks the store.
                pl.BlockSpec((None, C, t_tile), lambda b, t: (b, 0, t)),
                # alpha and 1/(alpha+eps), replicated across the grid
                pl.BlockSpec((C, 1), lambda b, t: (0, 0)),
                pl.BlockSpec((C, 1), lambda b, t: (0, 0)),
            ],
            out_specs=pl.BlockSpec((None, C, t_tile), lambda b, t: (b, 0, t)),
        ),
        compiler_params=pltpu.CompilerParams(
            dimension_semantics=("parallel", "parallel"),
            vmem_limit_bytes=vmem_limit_bytes,
        ),
        cost_estimate=cost,
        input_output_aliases=({0: 0} if donate_x else {}),
    )(x3, alpha_f32, inv_alpha_f32)

    return out.reshape(orig_shape)


if __name__ == "__main__":
    # Small shapes consistent with the module: batch=2, channels=4, seq=16.
    B, C, T = 2, 4, 16
    key = jax.random.PRNGKey(0)
    kx, ka = jax.random.split(key)
    x = jax.random.normal(kx, (B, C, T), dtype=jnp.float32)

    # Parameter init matching nn.Parameter(torch.ones(1, C, 1)).
    alpha = jnp.ones((1, C, 1), dtype=jnp.float32)

    out = jax.block_until_ready(snake1d(x, alpha))
    ref = x + (1.0 / (alpha + 1e-9)) * jnp.sin(alpha * x) ** 2
    assert out.shape == x.shape and out.dtype == x.dtype
    assert jnp.allclose(out, ref, atol=1e-6, rtol=1e-6)

    # Non-trivial per-channel alpha: exercises the broadcast, the hoisted f32
    # reciprocal, and the ragged (T=16 < t_tile=128) final-tile path.
    alpha2 = 0.5 + jax.random.uniform(ka, (1, C, 1), dtype=jnp.float32)
    out2 = jax.block_until_ready(snake1d(x, alpha2))
    ref2 = x + (1.0 / (alpha2 + 1e-9)) * jnp.sin(alpha2 * x) ** 2
    assert jnp.allclose(out2, ref2, atol=1e-6, rtol=1e-6)

    print("KERNEL_OK")
</pallas_src>

<mosaic_0001>
module attributes {stable_mosaic.version = 11 : i64} {
  func.func @_snake_kernel(%arg0: i32, %arg1: i32, %arg2: memref<1x4x128xf32, #tpu.memory_space<vmem>>, %arg3: memref<4x1xf32, #tpu.memory_space<vmem>>, %arg4: memref<4x1xf32, #tpu.memory_space<vmem>>, %arg5: memref<1x4x128xf32, #tpu.memory_space<vmem>>) attributes {dimension_semantics = [#tpu.dimension_semantics<parallel>, #tpu.dimension_semantics<parallel>], iteration_bounds = array<i64: 2, 1>, scalar_prefetch = 0 : i64, scratch_operands = 0 : i64, tpu.core_type = #tpu.core_type<tc>, window_params = [{transform_indices = @transform_0, window_bounds = array<i64: 1, 4, 128>}, {pipeline_mode = #tpu.pipeline_mode<synchronous>, transform_indices = @transform_1, window_bounds = array<i64: 4, 1>}, {pipeline_mode = #tpu.pipeline_mode<synchronous>, transform_indices = @transform_2, window_bounds = array<i64: 4, 1>}, {transform_indices = @transform_3, window_bounds = array<i64: 1, 4, 128>}]} {
    %c0 = arith.constant 0 : index
    %c0_0 = arith.constant 0 : index
    %c0_1 = arith.constant 0 : index
    %0 = vector.load %arg2[%c0, %c0_0, %c0_1] : memref<1x4x128xf32, #tpu.memory_space<vmem>>, vector<1x4x128xf32>
    %1 = vector.shape_cast %0 : vector<1x4x128xf32> to vector<4x128xf32>
    %c0_2 = arith.constant 0 : index
    %c0_3 = arith.constant 0 : index
    %2 = vector.load %arg3[%c0_2, %c0_3] : memref<4x1xf32, #tpu.memory_space<vmem>>, vector<4x1xf32>
    %3 = vector.broadcast %2 : vector<4x1xf32> to vector<4x128xf32>
    %4 = arith.mulf %3, %1 : vector<4x128xf32>
    %5 = math.sin %4 : vector<4x128xf32>
    %c0_4 = arith.constant 0 : index
    %c0_5 = arith.constant 0 : index
    %6 = vector.load %arg4[%c0_4, %c0_5] : memref<4x1xf32, #tpu.memory_space<vmem>>, vector<4x1xf32>
    %7 = arith.mulf %5, %5 : vector<4x128xf32>
    %8 = vector.broadcast %6 : vector<4x1xf32> to vector<4x128xf32>
    %9 = arith.mulf %8, %7 : vector<4x128xf32>
    %10 = arith.addf %1, %9 : vector<4x128xf32>
    %c0_6 = arith.constant 0 : index
    %c0_7 = arith.constant 0 : index
    %c0_8 = arith.constant 0 : index
    %11 = vector.load %arg5[%c0_6, %c0_7, %c0_8] : memref<1x4x128xf32, #tpu.memory_space<vmem>>, vector<1x4x128xf32>
    %12 = vector.shape_cast %11 : vector<1x4x128xf32> to vector<4x128xf32>
    %13 = vector.shape_cast %10 : vector<4x128xf32> to vector<1x4x128xf32>
    tpu.vector_store %arg5[%c0_6, %c0_7, %c0_8], %13 {strides = array<i32>} : memref<1x4x128xf32, #tpu.memory_space<vmem>>, vector<1x4x128xf32>,
    return
  }
  func.func @transform_0(%arg0: i32, %arg1: i32) -> (i32, i32, i32) {
    %c0_i32 = arith.constant 0 : i32
    %c0_i32_0 = arith.constant 0 : i32
    return %arg0, %c0_i32, %arg1 : i32, i32, i32
  }
  func.func @transform_1(%arg0: i32, %arg1: i32) -> (i32, i32) {
    %c0_i32 = arith.constant 0 : i32
    %c0_i32_0 = arith.constant 0 : i32
    %c0_i32_1 = arith.constant 0 : i32
    return %c0_i32, %c0_i32_0 : i32, i32
  }
  func.func @transform_2(%arg0: i32, %arg1: i32) -> (i32, i32) {
    %c0_i32 = arith.constant 0 : i32
    %c0_i32_0 = arith.constant 0 : i32
    %c0_i32_1 = arith.constant 0 : i32
    return %c0_i32, %c0_i32_0 : i32, i32
  }
  func.func @transform_3(%arg0: i32, %arg1: i32) -> (i32, i32, i32) {
    %c0_i32 = arith.constant 0 : i32
    %c0_i32_0 = arith.constant 0 : i32
    return %arg0, %c0_i32, %arg1 : i32, i32, i32
  }
}

</mosaic_0001>

<bundles_post_ra>
// kernel: tpu_custom_call.1
= control target key start
LH: loop header
LB: loop body
LE: loop exit
PB: predicated region body
PF: predicated region fallthrough
CT: control target
= control target key end

     0   :  { %8 = vsyncpa [#allocation3], 0  ;;  %s804_s0 = inlined_call_operand.vmem [shape: f32[2,4,16], index: 0, kind: input, shape index: {}]   ;;  %s805_s1 = inlined_call_operand.vmem [shape: f32[4,1], index: 1, kind: input, shape index: {}]   ;;  %s806_s2 = inlined_call_operand.vmem [shape: f32[4,1], index: 2, kind: input, shape index: {}]   ;;  %s807_s3 = inlined_call_operand.hbm [shape: f32[2,4,16], index: 3, kind: output, shape index: {}]  }
   0x1   :  { %10 = vsyncpa [#allocation3 + $0x1], 0  ;;  %s636_s12 = smov 0   ;;  %s638_s13 = smov 0  }
   0x2   :  { %s640_s14 = smov 0   ;;  %s642_s15 = smov 0  }
   0x3   :  { %s644_s16 = smov 0   ;;  %s646_s17 = smov 0  }
   0x4 LB: > { %s452_s18 = sadd.s32 4294967295, %s607_s17   ;;  %s453_s19 = sadd.s32 4294967294, %s607_s17   ;;  %s607_s17 = sphi %s646_s17, %s16_s17   ;;  %s603_s16 = sphi %s644_s16, %s814_s16   ;;  %s599_s15 = sphi %s642_s15, %s813_s15   ;;  %s595_s14 = sphi %s640_s14, %s812_s14   ;;  %s591_s13 = sphi %s638_s13, %s811_s13   ;;  %s587_s12 = sphi %s636_s12, %s810_s12  }
   0x5   : > { %s28_s20 = sadd.s32 1, %s603_s16  ;;  %s107_s21 = sadd.s32 1, %s595_s14 }
   0x6   : > { %p30_p0 = scmp.ge.s32.totalorder %s28_s20, 2  ;;  %p117_p1 = scmp.ne.s32.totalorder %s595_s14, %s591_s13 }
   0x7   : > { %p118_p2 = scmp.eq.s32.totalorder %s452_s18, 1  ;;  %p123_p3 = scmp.ne.s32.totalorder %s591_s13, %s587_s12 }
   0x8   : > { %s816_s20 = smov (%p30_p0, %s28_s20), 0  ;;  %p124_p5 = scmp.eq.s32.totalorder %s453_s19, 1 }
   0x9   : > { %p676_p4 = por %p118_p2, %p117_p1  ;;  %s102_s23 = ssub.s32 %s603_s16, %s816_s20 }
   0xa   : > { %p456_p6 = scmp.ge.s32.totalorder %s607_s17, 1  ;;  %p105_p7 = scmp.eq.s32.totalorder %s102_s23, 0 }
   0xb   : > { %p683_p8 = por %p124_p5, %p123_p3  ;;  %p158_p9 = scmp.lt.s32.totalorder %s607_s17, 3 }
   0xc   : > { %s689_s25 = scalar_select %p105_p7, %s595_s14, %s107_s21  }
   0xd   : > { %p159_p10 = pnand %p456_p6, %p158_p9 }
   0xe   : > { %p184_p11 = scmp.lt.s32.totalorder (!%p159_p10), %s599_s15, 1  ;;  %s181_s8 = sand.u32 (!%p159_p10), 1, %s591_s13  }
   0xf   : > { %162 = sbr.rel (%p159_p10) target bundleno = 244 (0xf4), region = 32  ;;  %s457_s9 = sshll.u32 (!%p159_p10), %s181_s8, 2 }
  0x10   : > { %s463_s10 = sshll.u32 (!%p159_p10), %s599_s15, 2  ;;  %s183_s21 = scalar_lea.vmem (!%p159_p10), [#allocation2], %s457_s9 }
  0x11   : > { %s376_s19 = scalar_lea.hbm (!%p159_p10), %s807_s3, %s463_s10  ;;  %s378_s23 = sshll.u32 (!%p159_p10), %s183_s21, 4  ;;  %s379_s23 = int_to_ptr.vmem [resolvable:$true] %s378_s23 }
  0x12   : > { %s380_s26 = sshll.u32 (!%p159_p10), %s376_s19, 4  ;;  %s381_s26 = int_to_ptr.hbm [resolvable:$true] %s380_s26 }
  0x13   : > { %s543_s27 = sshra.s32 (!%p159_p10), %s381_s26, 4  ;;  %s544_s27 = int_to_ptr.hbm [resolvable:$true] %s543_s27 }
  0x14   : > { %v192_v0 = vld [vmem:[%s805_s1] sm:$0xf]  ;;  %v609_v1 = vmov 0   ;;  %s185_s30 = scalar_select %p184_p11, %s599_s15, 1  ;;  %v610_v17 = vmov 683565275  }
  0x15   : > { %528 = vset.pattern.permute.xlu0 %v609_v1  ;;  %v354_v2 = vld [vmem:[%s806_s2] sm:$0xf]  ;;  %v611_v19 = vmov 2475754826   ;;  %v612_v22 = vmov 2131351028   ;;  %p550_p1 = scmp.lt.s32.totalorder %s544_s27, %s807_s3 }
  0x16   : > { %195 = vperm.xlu0 %528, %v192_v0   ;;  %s458_s4 = sshll.u32 %s185_s30, 2  ;;  %v613_v25 = vmov 2102212464   ;;  %v614_v28 = vmov 920167782   ;;  %s365_s15 = scalar_lea.sflag [#allocation3], %s181_s8 }
  0x17   : > { %s190_s7 = scalar_lea.vmem %s804_s0, %s458_s4  ;;  %v615_v31 = vmov 1326507024   ;;  %s545_s28 = scalar_lea.hbm %s544_s27, 4 }
  0x18   : > { %v703_v3 = vld [vmem:[%s190_s7] sm:$0xf]  ;;  %p546_p12 = scmp.ne.s32.totalorder %s544_s27, %s545_s28  ;;  %s549_s4 = scalar_lea.hbm %s807_s3, 8 }
  0x19   : > { %p551_p2 = scmp.lt.s32.totalorder %s549_s4, %s545_s28 }
  0x1a   : > { %p547_p13 = pnand %p546_p12, %p676_p4 }
  0x1b   : > { %p552_p3 = por %p551_p2, %p550_p1 }
  0x1c   : > { %p548_p0 = pneg %p547_p13 }
  0x1e   : > { %358 = vperm.xlu0 %528, %v354_v2   ;;  %p553_p5 = pnand %p552_p3, %p548_p0 }
  0x88   : > { %v196_v4 = vpop.permute.xlu0 %195 }
  0x89   : > { %v706_v5 = vmul.f32 %v196_v4, %v703_v3 }
  0x8b   : > { %v202_v6 = vand.u32 2139095040, %v706_v5  ;;  %v199_v9 = vand.u32 2147483647, %v706_v5  ;;  %vm201_vm12 = vcmp.lt.s32.totalorder %v706_v5, 0 }
  0x8d   : > { %v203_v7 = vshrl.u32 %v202_v6, 23  ;;  %v206_v11 = vand.u32 8388607, %v199_v9  ;;  %vm200_vm13 = vcmp.le.f32.partialorder %v199_v9, 0.7853982 }
  0x8f   : > { %v459_v8 = vadd.s32 4294967169, %v203_v7  ;;  %v207_v15 = vor.u32 8388608, %v206_v11 }
  0x91   : > { %v209_v10 = vadd.s32 1, %v459_v8  ;;  %v723_v38 = vshll.u32 %v207_v15, 8 }
  0x93   : > { %vm210_vm0 = vcmp.gt.s32.totalorder %v209_v10, 0  ;;  %v248_v47 = vand.u32 65535, %v723_v38  ;;  %v249_v52 = vshrl.u32 %v723_v38, 16 }
  0x94   : > { %v211_v12 = vsel %vm210_vm0, %v209_v10, 0 }
  0x95   : > { %v213_v13 = vand.u32 31, %v211_v12  ;;  %v714_v16 = vshrl.u32 %v211_v12, 5 }
  0x97   : > { %v712_v14 = vsub.s32 32, %v213_v13  ;;  %v216_v18 = vshll.u32 %v610_v17, %v213_v13  ;;  %v219_v20 = vshll.u32 %v611_v19, %v213_v13  ;;  %v222_v24 = vshll.u32 %v612_v22, %v213_v13 }
  0x98   : > { %v225_v27 = vshll.u32 %v613_v25, %v213_v13  ;;  %v228_v30 = vshll.u32 %v614_v28, %v213_v13  ;;  %vm231_vm1 = vcmp.lt.s32.totalorder %v714_v16, 1  ;;  %vm234_vm2 = vcmp.lt.s32.totalorder %v714_v16, 4 }
  0x99   : > { %v217_v21 = vshrl.u32 %v611_v19, %v712_v14  ;;  %v220_v23 = vshrl.u32 %v612_v22, %v712_v14  ;;  %v223_v26 = vshrl.u32 %v613_v25, %v712_v14  ;;  %v226_v29 = vshrl.u32 %v614_v28, %v712_v14 }
  0x9a   : > { %v229_v32 = vshrl.u32 %v615_v31, %v712_v14  ;;  %vm233_vm3 = vcmp.lt.s32.totalorder %v714_v16, 3  ;;  %vm232_vm4 = vcmp.lt.s32.totalorder %v714_v16, 2  ;;  %v215_v12 = vshrl.u32 %v610_v17, %v712_v14 }
  0x9b   : > { %v218_v33 = vor.u32 %v217_v21, %v216_v18  ;;  %v221_v34 = vor.u32 %v220_v23, %v219_v20  ;;  %v224_v35 = vor.u32 %v223_v26, %v222_v24  ;;  %v227_v36 = vor.u32 %v226_v29, %v225_v27 }
  0x9c   : > { %v230_v37 = vor.u32 %v229_v32, %v228_v30 }
  0x9d   : > { %v239_v39 = vsel %vm231_vm1, %v218_v33, %v221_v34  ;;  %v243_v40 = vsel %vm231_vm1, %v221_v34, %v224_v35  ;;  %v240_v41 = vsel %vm234_vm2, %v227_v36, 920167782  ;;  %v236_v6 = vsel %vm234_vm2, %v224_v35, 2102212464 }
  0x9e   : > { %v244_v42 = vsel %vm234_vm2, %v230_v37, 1326507024  ;;  %v241_v43 = vsel %vm233_vm3, %v224_v35, %v240_v41  ;;  %v235_v22 = vsel %vm231_vm1, %v215_v12, %v218_v33  ;;  %v237_v23 = vsel %vm233_vm3, %v221_v34, %v236_v6 }
  0x9f   : > { %v245_v44 = vsel %vm233_vm3, %v227_v36, %v244_v42  ;;  %v242_v45 = vsel %vm232_vm4, %v239_v39, %v241_v43  ;;  %v238_v14 = vsel %vm232_vm4, %v235_v22, %v237_v23  ;;  %vm342_vm1 = vweird.f32 %v706_v5 }
  0xa0   : > { %v246_v46 = vsel %vm232_vm4, %v243_v40, %v245_v44  ;;  %v272_v50 = vand.u32 65535, %v242_v45  ;;  %v273_v51 = vshrl.u32 %v242_v45, 16  ;;  %v292_v30 = vmul.u32 %v723_v38, %v238_v14 }
  0xa1   : > { %v250_v48 = vand.u32 65535, %v246_v46  ;;  %v251_v49 = vshrl.u32 %v246_v46, 16 }
  0xa2   : > { %v275_v54 = vmul.u32 %v273_v51, %v248_v47  ;;  %v276_v56 = vmul.u32 %v272_v50, %v249_v52  ;;  %v274_v59 = vmul.u32 %v272_v50, %v248_v47  ;;  %v277_v62 = vmul.u32 %v273_v51, %v249_v52 }
  0xa3   : > { %v253_v53 = vmul.u32 %v251_v49, %v248_v47  ;;  %v254_v55 = vmul.u32 %v250_v48, %v249_v52  ;;  %v252_v57 = vmul.u32 %v250_v48, %v248_v47  ;;  %v255_v61 = vmul.u32 %v251_v49, %v249_v52 }
  0xa4   : > { %v278_v60 = vshll.u32 %v275_v54, 16  ;;  %v280_v0 = vshll.u32 %v276_v56, 16  ;;  %v279_v20 = vshrl.u32 %v275_v54, 16  ;;  %v281_v26 = vshrl.u32 %v276_v56, 16 }
  0xa5   : > { %v256_v58 = vshll.u32 %v253_v53, 16  ;;  %v258_v63 = vshll.u32 %v254_v55, 16  ;;  %v257_v18 = vshrl.u32 %v253_v53, 16  ;;  %v259_v24 = vshrl.u32 %v254_v55, 16 }
  0xa6   : > { %vm282_vm6 = vc.u32 %v274_v59, %v278_v60  ;;  %v284_v4 = vadd.s32 %v278_v60, %v274_v59 }
  0xa7   : > { %vm260_vm5 = vc.u32 %v252_v57, %v256_v58  ;;  %v262_v2 = vadd.s32 %v256_v58, %v252_v57  ;;  %v283_v8 = vsel %vm282_vm6, 1, %v609_v1 }
  0xa8   : > { %v261_v7 = vsel %vm260_vm5, 1, %v609_v1  ;;  %v285_v11 = vadd.s32 %v283_v8, %v277_v62  ;;  %vm286_vm8 = vc.u32 %v284_v4, %v280_v0  ;;  %v288_v28 = vadd.s32 %v284_v4, %v280_v0 }
  0xa9   : > { %v263_v10 = vadd.s32 %v261_v7, %v255_v61  ;;  %vm264_vm7 = vc.u32 %v262_v2, %v258_v63  ;;  %v287_v15 = vsel %vm286_vm8, 1, %v609_v1 }
  0xaa   : > { %v265_v13 = vsel %vm264_vm7, 1, %v609_v1  ;;  %v289_v21 = vadd.s32 %v287_v15, %v285_v11 }
  0xab   : > { %v267_v19 = vadd.s32 %v265_v13, %v263_v10 }
  0xac   : > { %v290_v27 = vadd.s32 %v289_v21, %v279_v20 }
  0xad   : > { %v268_v25 = vadd.s32 %v267_v19, %v257_v18 }
  0xae   : > { %v291_v1 = vadd.s32 %v290_v27, %v281_v26 }
  0xaf   : > { %v269_v17 = vadd.s32 %v268_v25, %v259_v24  ;;  %v359_v24 = vpop.permute.xlu0 %358 }
  0xb0   : > { %v295_v29 = vadd.s32 1, %v291_v1 }
  0xb1   : > { %vm294_vm9 = vc.u32 %v269_v17, %v288_v28  ;;  %v293_v42 = vadd.s32 %v288_v28, %v269_v17 }
  0xb2   : > { %v296_v31 = vsel %vm294_vm9, %v295_v29, %v291_v1 }
  0xb3   : > { %v297_v32 = vadd.s32 %v296_v31, %v292_v30 }
  0xb5   : > { %v298_v33 = vadd.s32 536870912, %v297_v32 }
  0xb7   : > { %v299_v35 = vshrl.u32 %v298_v33, 30 }
  0xb9   : > { %v300_v36 = vshll.u32 %v299_v35, 30  ;;  %v323_v55 = vsub.s32 4, %v299_v35 }
  0xbb   : > { %v301_v34 = vsub.s32 %v297_v32, %v300_v36  ;;  %v324_v60 = vsel %vm201_vm12, %v323_v55, %v299_v35 }
  0xbc   : > { %v326_v63 = vsel %vm200_vm13, 0, %v324_v60 }
  0xbd   : > { %vm302_vm10 = vcmp.lt.s32.totalorder %v301_v34, 0  ;;  %v303_v37 = vsub.s32 0, %v301_v34  ;;  %v343_v7 = vadd.s32 3, %v326_v63 }
  0xbf   : > { %v304_v39 = vsel %vm302_vm10, %v303_v37, %v301_v34  ;;  %v344_v12 = vand.u32 3, %v343_v7 }
  0xc0   : > { %v305_v40 = vclz %v304_v39 }
  0xc1   : > { %vm346_vm14 = vcmp.eq.s32.totalorder %v344_v12, 0  ;;  %vm349_vm15 = vcmp.eq.s32.totalorder %v344_v12, 2  ;;  %vm345_vm0 = vcmp.lt.s32.totalorder %v344_v12, 2 }
  0xc2   : > { %v460_v41 = vadd.s32 4294967294, %v305_v40 }
  0xc4   : > { %vm461_vm11 = vcmp.lt.s32.totalorder %v460_v41, 0 }
  0xc5   : > { %v308_v16 = vsel %vm461_vm11, 0, %v460_v41 }
  0xc6   : > { %v309_v43 = vsub.s32 32, %v308_v16  ;;  %v313_v44 = vsub.s32 4294967266, %v308_v16  ;;  %v310_v45 = vshll.u32 %v301_v34, %v308_v16 }
  0xc8   : > { %v311_v46 = vshrl.u32 %v293_v42, %v309_v43  ;;  %v314_v47 = vadd.s32 127, %v313_v44 }
  0xca   : > { %v312_v38 = vor.u32 %v311_v46, %v310_v45  ;;  %v315_v48 = vshll.u32 %v314_v47, 23 }
  0xcc   : > { %v316_v49 = vor.u32 4788187, %v315_v48  ;;  %v319_v51 = vcvt.s32.f32 %v312_v38 }
  0xce   : > { %v317_v50 = vand.u32 2147483647, %v316_v49 }
  0xd0   : > { %v320_v52 = vmul.f32 %v319_v51, %v317_v50 }
  0xd2   : > { %v321_v53 = vxor.u32 2147483648, %v320_v52 }
  0xd4   : > { %v322_v54 = vsel %vm201_vm12, %v321_v53, %v320_v52 }
  0xd5   : > { %v325_v56 = vsel %vm200_vm13, %v706_v5, %v322_v54 }
  0xd6   : > { %v327_v57 = vmul.f32 %v325_v56, %v325_v56 }
  0xd8   : > { %v328_v58 = vmul.f32 -0.001358992, %v327_v57  ;;  %v335_v59 = vmul.f32 -0.00019511016, %v327_v57 }
  0xda   : > { %v329_v61 = vadd.f32 0.041655596, %v328_v58  ;;  %v336_v62 = vadd.f32 0.008332121, %v335_v59 }
  0xdc   : > { %v330_v0 = vmul.f32 %v329_v61, %v327_v57  ;;  %v337_v2 = vmul.f32 %v336_v62, %v327_v57 }
  0xde   : > { %v331_v4 = vadd.f32 -0.4999988, %v330_v0  ;;  %v338_v6 = vadd.f32 -0.16666654, %v337_v2 }
  0xe0   : > { %v332_v8 = vmul.f32 %v331_v4, %v327_v57  ;;  %v339_v9 = vmul.f32 %v338_v6, %v327_v57 }
  0xe2   : > { %v333_v10 = vadd.f32 1.0, %v332_v8  ;;  %v340_v11 = vadd.f32 1.0, %v339_v9 }
  0xe4   : > { %v341_v13 = vmul.f32 %v340_v11, %v325_v56  ;;  %v350_v15 = vxor.u32 2147483648, %v333_v10 }
  0xe6   : > { %v347_v18 = vxor.u32 2147483648, %v341_v13  ;;  %v351_v20 = vsel %vm349_vm15, %v350_v15, %v341_v13 }
  0xe8   : > { %v348_v19 = vsel %vm346_vm14, %v333_v10, %v347_v18 }
  0xe9   : > { %v352_v21 = vsel %vm345_vm0, %v348_v19, %v351_v20 }
  0xea   : > { %v353_v22 = vsel %vm342_vm1, nan, %v352_v21 }
  0xeb   : > { %v355_v23 = vmul.f32 %v353_v22, %v353_v22 }
  0xed   : > { %v361_v25 = vmul.f32 %v359_v24, %v355_v23 }
  0xef   : > { %v362_v26 = vadd.f32 %v361_v25, %v703_v3 }
  0xf1   : > { %363 = vst [vmem:[%s183_s21] sm:$0xf] %v362_v26 }
  0xf2   : > { %556 = shalt.err (!%p553_p5)
}
  0xf3   : > { %466 = dma.vmem_to_hbm [thread:$0]  (%p676_p4), %s379_s23, 64, %s381_s26, %s365_s15  }
  0xf4 PF: > { %p472_p6 = scmp.ge.s32.totalorder %s607_s17, 2  ;;  %s392_s7 = sand.u32 1, %s587_s12  }
  0xf5   : > { %s393_s8 = scalar_lea.sflag [#allocation3], %s392_s7 }
  0xf6   : > { %p469_p7 = pnand %p472_p6, %p683_p8 }
  0xf8   : > { %p470_p9 = pneg %p469_p7 }
  0xfa   : > { %582 = dma.done.wait (%p470_p9), %s393_s8, 64  }
  0xfb   : > { %584 = vsyncadd (%p470_p9), %s393_s8, 4294967232  ;;  %s16_s17 = sadd.s32 1, %s607_s17   ;;  %s810_s12 = smov %s591_s13 }
  0xfc   : > { %p13_p10 = scmp.ge.s32.totalorder %s16_s17, 4   ;;  %s811_s13 = smov %s595_s14 }
  0xfd   : > { %s812_s14 = smov %s689_s25  ;;  %s813_s15 = smov %s603_s16 }
  0xfe   : > { %s814_s16 = smov %s816_s20  ;;  %15 = sbr.rel (!%p13_p10) target bundleno = 4 (0x4), region = 67 }
 0x103   :  { %399 = vsyncpa [#allocation3], 1 }
 0x104   :  { %401 = vsyncpa [#allocation3 + $0x1], 1 }

</bundles_post_ra>
